<compile_context>
chip_gen: v7x
topology: tpu7x:2x2x1
jax: 0.10.0
libtpu: 0.0.40
codegen_flags: <defaults>
</compile_context>

<pallas_src>
import jax
import jax.numpy as jnp
from jax import lax
from jax.experimental import pallas as pl
from jax.experimental.pallas import tpu as pltpu

EPS = 1e-5
_VMEM_BUF_BUDGET = 24 * 1024 * 1024  # bytes for (in + out) double-buffered tiles


def _masked_layernorm_kernel(x_ref, w_ref, b_ref, o_ref):
    # x_ref: (tile_rows, H); w_ref / b_ref: (1, H) pre-masked effective params.
    x = x_ref[...].astype(jnp.float32)
    inv_h = 1.0 / x.shape[-1]

    # Single-pass statistics: mean and E[x^2] in one sweep over the lane axis.
    mean = jnp.sum(x, axis=-1, keepdims=True) * inv_h
    mean_sq = jnp.sum(x * x, axis=-1, keepdims=True) * inv_h
    var = jnp.maximum(mean_sq - mean * mean, 0.0)
    inv_std = lax.rsqrt(var + EPS)          # EUP slot -> effectively free
    x_hat = (x - mean) * inv_std

    w = w_ref[...].astype(jnp.float32)
    b = b_ref[...].astype(jnp.float32)
    o_ref[...] = (x_hat * w + b).astype(o_ref.dtype)


def _pick_tile_rows(rows, h, itemsize):
    """Largest row-tile that fits the VMEM budget, sublane-packing aligned."""
    sub = max(8, 32 // itemsize)                   # 8 f32, 16 bf16, 32 int8/fp8
    by_vmem = max(sub, _VMEM_BUF_BUDGET // (4 * h * itemsize))  # in+out, x2 bufs
    tile = min(2048, by_vmem, max(rows, sub))
    return max(sub, (tile // sub) * sub)


def self_mask_layer_norm_v2(x, weight, weight_scores, bias, bias_scores,
                            *, tile_rows=None):
    """x: (..., H); params: (H,). Returns same shape/dtype as x."""
    H = x.shape[-1]
    orig_shape = x.shape
    out_dtype = x.dtype
    x2 = x.reshape(-1, H)
    R = x2.shape[0]
    itemsize = jnp.dtype(x.dtype).itemsize

    if tile_rows is None:
        tile_rows = _pick_tile_rows(R, H, itemsize)

    # Hoisted mask math: compute effective weight/bias once (tiny O(H) XLA op)
    # instead of re-running it on every grid step inside the kernel.
    f32 = jnp.float32
    ws = weight_scores.astype(f32)
    bs = bias_scores.astype(f32)
    w_eff = (weight.astype(f32) * ((ws > 0.0).astype(f32) + 1.0)).reshape(1, H)
    b_eff = (bias.astype(f32)
             * ((jnp.abs(bs) > 0.5).astype(f32) * jnp.sign(bs))).reshape(1, H)

    # Ragged rows: cdiv grid + zero-pad (padded rows produce finite garbage
    # that is sliced off; no NaNs since eps > 0).
    n_tiles = pl.cdiv(R, tile_rows)
    R_pad = n_tiles * tile_rows
    if R_pad != R:
        x2 = jnp.pad(x2, ((0, R_pad - R), (0, 0)))

    # VMEM sizing: in + out blocks, double buffered, plus headroom.
    buf_bytes = 4 * tile_rows * H * itemsize
    vmem_limit = int(min(96 * 1024 * 1024,
                         max(32 * 1024 * 1024, 2 * buf_bytes)))

    param_spec = pl.BlockSpec((1, H), lambda i: (0, 0))
    out = pl.pallas_call(
        _masked_layernorm_kernel,
        out_shape=jax.ShapeDtypeStruct((R_pad, H), out_dtype),
        grid_spec=pltpu.PrefetchScalarGridSpec(
            num_scalar_prefetch=0,
            grid=(n_tiles,),
            in_specs=[
                pl.BlockSpec((tile_rows, H), lambda i: (i, 0)),
                param_spec,
                param_spec,
            ],
            out_specs=pl.BlockSpec((tile_rows, H), lambda i: (i, 0)),
        ),
        compiler_params=pltpu.CompilerParams(
            dimension_semantics=("parallel",),
            vmem_limit_bytes=vmem_limit,
        ),
    )(x2, w_eff, b_eff)

    if R_pad != R:
        out = out[:R]
    return out.reshape(orig_shape)


def reference_jax(x, weight, weight_scores, bias, bias_scores):
    """Pure-JAX reference of the PyTorch forward."""
    w_eff = weight * ((weight_scores > 0.0).astype(x.dtype) + 1.0)
    b_eff = bias * ((jnp.abs(bias_scores) > 0.5).astype(x.dtype)
                    * jnp.sign(bias_scores))
    mean = jnp.mean(x, axis=-1, keepdims=True)
    var = jnp.mean((x - mean) ** 2, axis=-1, keepdims=True)
    x_hat = (x - mean) / jnp.sqrt(var + EPS)
    return x_hat * w_eff + b_eff


if __name__ == "__main__":
    H = 128  # normalized_shape = (H,)
    key = jax.random.PRNGKey(0)
    k_x, k_ws, k_b, k_bs, k_x2 = jax.random.split(key, 5)

    # Deterministic param init mirroring the module's reset_parameters:
    weight = jnp.ones((H,), dtype=jnp.float32)                        # ones_
    weight_scores = 0.1 * jax.random.normal(k_ws, (H,), jnp.float32)  # N(0,0.1)
    bias = 0.1 * jax.random.normal(k_b, (H,), jnp.float32)            # N(0,0.1)
    bias_scores = 0.1 * jax.random.normal(k_bs, (H,), jnp.float32)    # N(0,0.1)

    # Case 1: (B, S, H) = (2, 8, 128)
    x = jax.random.normal(k_x, (2, 8, H), dtype=jnp.float32)
    out = jax.block_until_ready(
        self_mask_layer_norm_v2(x, weight, weight_scores, bias, bias_scores))
    ref = reference_jax(x, weight, weight_scores, bias, bias_scores)
    assert out.shape == x.shape and out.dtype == x.dtype
    assert jnp.allclose(out, ref, atol=2e-5, rtol=1e-5), "mismatch (case 1)"

    # Case 2: ragged row count (3*5 = 15 rows) exercises the padded-tail path.
    x_r = jax.random.normal(k_x2, (3, 5, H), dtype=jnp.float32)
    out_r = jax.block_until_ready(
        self_mask_layer_norm_v2(x_r, weight, weight_scores, bias, bias_scores))
    ref_r = reference_jax(x_r, weight, weight_scores, bias, bias_scores)
    assert out_r.shape == x_r.shape and out_r.dtype == x_r.dtype
    assert jnp.allclose(out_r, ref_r, atol=2e-5, rtol=1e-5), "mismatch (case 2)"

    print("KERNEL_OK")
</pallas_src>

<mosaic_0001>
module attributes {stable_mosaic.version = 11 : i64} {
  func.func @_masked_layernorm_kernel(%arg0: i32, %arg1: memref<16x128xf32, #tpu.memory_space<vmem>>, %arg2: memref<1x128xf32, #tpu.memory_space<vmem>>, %arg3: memref<1x128xf32, #tpu.memory_space<vmem>>, %arg4: memref<16x128xf32, #tpu.memory_space<vmem>>) attributes {dimension_semantics = [#tpu.dimension_semantics<parallel>], iteration_bounds = array<i64: 1>, scalar_prefetch = 0 : i64, scratch_operands = 0 : i64, tpu.core_type = #tpu.core_type<tc>, window_params = [{transform_indices = @transform_0, window_bounds = array<i64: 16, 128>}, {pipeline_mode = #tpu.pipeline_mode<synchronous>, transform_indices = @transform_1, window_bounds = array<i64: 1, 128>}, {pipeline_mode = #tpu.pipeline_mode<synchronous>, transform_indices = @transform_2, window_bounds = array<i64: 1, 128>}, {transform_indices = @transform_3, window_bounds = array<i64: 16, 128>}]} {
    %c0 = arith.constant 0 : index
    %c0_0 = arith.constant 0 : index
    %0 = vector.load %arg1[%c0, %c0_0] : memref<16x128xf32, #tpu.memory_space<vmem>>, vector<16x128xf32>
    %cst = arith.constant dense<0.000000e+00> : vector<16xf32>
    %1 = vector.multi_reduction <add>, %0, %cst [1] : vector<16x128xf32> to vector<16xf32>
    %2 = vector.shape_cast %1 : vector<16xf32> to vector<16x1xf32>
    %cst_1 = arith.constant 7.812500e-03 : f32
    %3 = vector.broadcast %cst_1 : f32 to vector<16x1xf32>
    %4 = arith.mulf %2, %3 : vector<16x1xf32>
    %5 = arith.mulf %0, %0 : vector<16x128xf32>
    %cst_2 = arith.constant dense<0.000000e+00> : vector<16xf32>
    %6 = vector.multi_reduction <add>, %5, %cst_2 [1] : vector<16x128xf32> to vector<16xf32>
    %7 = vector.shape_cast %6 : vector<16xf32> to vector<16x1xf32>
    %cst_3 = arith.constant 7.812500e-03 : f32
    %8 = vector.broadcast %cst_3 : f32 to vector<16x1xf32>
    %9 = arith.mulf %7, %8 : vector<16x1xf32>
    %10 = arith.mulf %4, %4 : vector<16x1xf32>
    %11 = arith.subf %9, %10 : vector<16x1xf32>
    %cst_4 = arith.constant 0.000000e+00 : f32
    %12 = vector.broadcast %cst_4 : f32 to vector<16x1xf32>
    %13 = arith.maximumf %11, %12 : vector<16x1xf32>
    %cst_5 = arith.constant 9.99999974E-6 : f32
    %14 = vector.broadcast %cst_5 : f32 to vector<16x1xf32>
    %15 = arith.addf %13, %14 : vector<16x1xf32>
    %16 = math.rsqrt %15 : vector<16x1xf32>
    %17 = vector.broadcast %4 : vector<16x1xf32> to vector<16x128xf32>
    %18 = arith.subf %0, %17 : vector<16x128xf32>
    %19 = vector.broadcast %16 : vector<16x1xf32> to vector<16x128xf32>
    %20 = arith.mulf %18, %19 : vector<16x128xf32>
    %c0_6 = arith.constant 0 : index
    %c0_7 = arith.constant 0 : index
    %21 = vector.load %arg2[%c0_6, %c0_7] : memref<1x128xf32, #tpu.memory_space<vmem>>, vector<1x128xf32>
    %c0_8 = arith.constant 0 : index
    %c0_9 = arith.constant 0 : index
    %22 = vector.load %arg3[%c0_8, %c0_9] : memref<1x128xf32, #tpu.memory_space<vmem>>, vector<1x128xf32>
    %23 = vector.broadcast %21 : vector<1x128xf32> to vector<16x128xf32>
    %24 = arith.mulf %20, %23 : vector<16x128xf32>
    %25 = vector.broadcast %22 : vector<1x128xf32> to vector<16x128xf32>
    %26 = arith.addf %24, %25 : vector<16x128xf32>
    %c0_10 = arith.constant 0 : index
    %c0_11 = arith.constant 0 : index
    %27 = vector.load %arg4[%c0_10, %c0_11] : memref<16x128xf32, #tpu.memory_space<vmem>>, vector<16x128xf32>
    tpu.vector_store %arg4[%c0_10, %c0_11], %26 {strides = array<i32>} : memref<16x128xf32, #tpu.memory_space<vmem>>, vector<16x128xf32>,
    return
  }
  func.func @transform_0(%arg0: i32) -> (i32, i32) {
    %c0_i32 = arith.constant 0 : i32
    %c0_i32_0 = arith.constant 0 : i32
    return %arg0, %c0_i32 : i32, i32
  }
  func.func @transform_1(%arg0: i32) -> (i32, i32) {
    %c0_i32 = arith.constant 0 : i32
    %c0_i32_0 = arith.constant 0 : i32
    %c0_i32_1 = arith.constant 0 : i32
    return %c0_i32, %c0_i32_0 : i32, i32
  }
  func.func @transform_2(%arg0: i32) -> (i32, i32) {
    %c0_i32 = arith.constant 0 : i32
    %c0_i32_0 = arith.constant 0 : i32
    %c0_i32_1 = arith.constant 0 : i32
    return %c0_i32, %c0_i32_0 : i32, i32
  }
  func.func @transform_3(%arg0: i32) -> (i32, i32) {
    %c0_i32 = arith.constant 0 : i32
    %c0_i32_0 = arith.constant 0 : i32
    return %arg0, %c0_i32 : i32, i32
  }
}

</mosaic_0001>

<bundles_post_ra>
// kernel: tpu_custom_call.1
= control target key start
LH: loop header
LB: loop body
LE: loop exit
PB: predicated region body
PF: predicated region fallthrough
CT: control target
= control target key end

     0   :  { %8 = vsyncpa [#allocation3], 0  ;;  %s214_s0 = inlined_call_operand.hbm [shape: f32[16,128], index: 0, kind: input, shape index: {}]   ;;  %s215_s1 = inlined_call_operand.vmem [shape: f32[1,128], index: 1, kind: input, shape index: {}]   ;;  %s216_s2 = inlined_call_operand.vmem [shape: f32[1,128], index: 2, kind: input, shape index: {}]   ;;  %s217_s3 = inlined_call_operand.hbm [shape: f32[16,128], index: 3, kind: output, shape index: {}]  }
   0x1   :  { %9 = vsyncpa [#allocation4], 0  ;;  %s154_s12 = smov [#allocation2]   ;;  %s106_s16 = scalar_lea.hbm %s214_s0, 256 }
   0x2   :  { %s15_s13 = sshll.u32 %s154_s12, 4  ;;  %p107_p0 = scmp.ne.s32.totalorder %s214_s0, %s106_s16  ;;  %s16_s13 = int_to_ptr.vmem [resolvable:$true] %s15_s13 }
   0x3   :  { %p110_p1 = scmp.lt.u32.totalorder %s106_s16, %s214_s0 }
   0x5   :  { %p112_p2 = pnand %p110_p1, %p107_p0 }
   0x7   :  { %115 = shalt.err (!%p112_p2)
}
   0x8   :  { %s116_s21 = scalar_lea.vmem %s16_s13, 256  ;;  %p121_p4 = scmp.lt.s32.totalorder %s16_s13, %s16_s13 }
   0x9   :  { %p117_p3 = scmp.ne.s32.totalorder %s16_s13, %s116_s21  ;;  %p122_p5 = scmp.lt.s32.totalorder %s116_s21, %s116_s21 }
   0xb   :  { %p123_p6 = por %p122_p5, %p121_p4 }
   0xd   :  { %p124_p7 = pnand %p123_p6, %p117_p3 }
   0xf   :  { %127 = shalt.err (!%p124_p7)
}
  0x10   :  { %s155_s22 = smov 128   ;;  %s156_s23 = smov 8  }
  0x11   :  { %21 = dma.hbm_to_vmem [thread:$0]  %s214_s0, 256, %s16_s13, [#allocation3], %s155_s22, %s155_s22, %s156_s23  }
  0x12   :  { %150 = dma.done.wait [#allocation3], 256  }
  0x13   :  { %151 = vsyncadd [#allocation3], 4294967040  ;;  %v29_v0 = vld [vmem:[#allocation2] sm:$0xff]  ;;  %v30_v1 = vld [vmem:[#allocation2 + $0x8] sm:$0xff]  ;;  %s157_s29 = smov [#allocation5]  }
  0x14   :  { %31 = vadd.xlane.f32.xlu0 %v29_v0  ;;  %v37_v2 = vmul.f32 %v29_v0, %v29_v0  ;;  %v38_v3 = vmul.f32 %v30_v1, %v30_v1  ;;  %v96_v22 = vld [vmem:[%s215_s1] ss:$0 sm:$0xff]  ;;  %s84_s30 = sshll.u32 %s157_s29, 4  ;;  %s85_s30 = int_to_ptr.vmem [resolvable:$true] %s84_s30 }
  0x15   :  { %v97_v24 = vld [vmem:[%s216_s2] ss:$0 sm:$0xff]  ;;  %s128_s4 = scalar_lea.vmem %s85_s30, 256  ;;  %p133_p9 = scmp.lt.s32.totalorder %s85_s30, %s85_s30 }
  0x16   :  { %39 = vadd.xlane.f32.xlu1 %v37_v2  ;;  %p129_p8 = scmp.ne.s32.totalorder %s85_s30, %s128_s4  ;;  %p134_p10 = scmp.lt.s32.totalorder %s128_s4, %s128_s4 }
  0x18   :  { %33 = vadd.xlane.f32.xlu0 %v30_v1  ;;  %p135_p11 = por %p134_p10, %p133_p9 }
  0x1a   :  { %41 = vadd.xlane.f32.xlu1 %v38_v3  ;;  %p136_p12 = pnand %p135_p11, %p129_p8 }
  0xa1   :  { %v32_v4 = vpop.xlane.xlu0 %31 }
  0xa2   :  { %v35_v5 = vmul.f32 0.0078125, %v32_v4 }
  0xa3   :  { %v40_v6 = vpop.xlane.xlu1 %39 }
  0xa4   :  { %v45_v7 = vmul.f32 %v35_v5, %v35_v5  ;;  %v43_v8 = vmul.f32 0.0078125, %v40_v6  ;;  %v55_v20 = vsub.f32 %v29_v0, %v35_v5 }
  0xa5   :  { %v34_v9 = vpop.xlane.xlu0 %33 }
  0xa6   :  { %v47_v10 = vsub.f32 %v43_v8, %v45_v7  ;;  %v36_v11 = vmul.f32 0.0078125, %v34_v9 }
  0xa7   :  { %v42_v12 = vpop.xlane.xlu1 %41 }
  0xa8   :  { %v49_v13 = vmax.f32 %v47_v10, 0.0  ;;  %v46_v14 = vmul.f32 %v36_v11, %v36_v11  ;;  %v44_v15 = vmul.f32 0.0078125, %v42_v12  ;;  %v56_v25 = vsub.f32 %v30_v1, %v36_v11 }
  0xaa   :  { %v51_v16 = vadd.f32 1e-05, %v49_v13  ;;  %v48_v17 = vsub.f32 %v44_v15, %v46_v14 }
  0xac   :  { %102 = vrsqrt.f32 %v51_v16  ;;  %v50_v18 = vmax.f32 %v48_v17, 0.0 }
  0xae   :  { %v52_v19 = vadd.f32 1e-05, %v50_v18 }
  0xb0   :  { %104 = vrsqrt.f32 %v52_v19 }
  0xb6   :  { %v103_v21 = vpop.eup %102 }
  0xb7   :  { %v57_v23 = vmul.f32 %v103_v21, %v55_v20 }
  0xb9   :  { %v67_v26 = vmul.f32 %v96_v22, %v57_v23 }
  0xba   :  { %v105_v27 = vpop.eup %104 }
  0xbb   :  { %v58_v28 = vmul.f32 %v105_v27, %v56_v25  ;;  %v75_v29 = vadd.f32 %v97_v24, %v67_v26 }
  0xbd   :  { %v68_v30 = vmul.f32 %v96_v22, %v58_v28  ;;  %77 = vst [vmem:[#allocation5] sm:$0xff] %v75_v29 }
  0xbf   :  { %v76_v31 = vadd.f32 %v97_v24, %v68_v30 }
  0xc1   :  { %78 = vst [vmem:[#allocation5 + $0x8] sm:$0xff] %v76_v31 }
  0xc2   :  { %139 = shalt.err (!%p136_p12)
}
  0xc3   :  { %s140_s5 = scalar_lea.hbm %s217_s3, 256 }
  0xc4   :  { %p141_p13 = scmp.ne.s32.totalorder %s217_s3, %s140_s5  ;;  %p144_p0 = scmp.lt.u32.totalorder %s140_s5, %s217_s3 }
  0xc6   :  { %p146_p1 = pnand %p144_p0, %p141_p13 }
  0xc8   :  { %149 = shalt.err (!%p146_p1)
}
  0xc9   :  { %90 = dma.vmem_to_hbm [thread:$0]  %s85_s30, 256, %s217_s3, [#allocation4], %s155_s22, %s155_s22, %s156_s23  }
  0xca   :  { %152 = dma.done.wait [#allocation4], 256  }
  0xcb   :  { %153 = vsyncadd [#allocation4], 4294967040 }
  0xcc   :  { %94 = vsyncpa [#allocation3], 1 }
  0xcd   :  { %95 = vsyncpa [#allocation4], 1 }

</bundles_post_ra>
